<compile_context>
chip_gen: v5e
topology: v5e:2x2
jax: 0.10.0
libtpu: 0.0.40
codegen_flags: <defaults>
</compile_context>

<pallas_src>
import jax
import jax.numpy as jnp
from jax.experimental import pallas as pl
from jax.experimental.pallas import tpu as pltpu


def _pe_add_kernel(x_ref, pe_ref, o_ref):
    # Broadcast add over the leading (batch-block) dim; accumulate in f32
    # (pe stays f32 end-to-end) and cast once on the way out.  The cast is
    # free VPU work under an HBM-bound roofline.
    o_ref[...] = (x_ref[...].astype(jnp.float32) + pe_ref[...]).astype(o_ref.dtype)


def build_positional_encoding(max_len: int, d_model: int) -> jax.Array:
    """float32 (max_len, d_model) buffer identical to the PyTorch module.

    NOTE: the reference module uses `max_len` as the frequency base
    (den = 1 / max_len ** (2*i/d_model)), not the canonical 10000.0.
    """
    assert d_model % 2 == 0, "reference module requires an even d_model"
    pos = jnp.arange(max_len, dtype=jnp.float32)[:, None]                 # (max_len, 1)
    tmp = jnp.arange(0, d_model, 2, dtype=jnp.float32)                    # (d_model//2,)
    den = 1.0 / jnp.power(jnp.float32(max_len), 2.0 * tmp / d_model)      # (d_model//2,)
    ang = pos * den[None, :]                                              # (max_len, d/2)
    pe = jnp.zeros((max_len, d_model), dtype=jnp.float32)
    pe = pe.at[:, 0::2].set(jnp.sin(ang))
    pe = pe.at[:, 1::2].set(jnp.cos(ang))
    return pe


def _round_up(v: int, m: int) -> int:
    return -(-v // m) * m


def _sublane_pack(dtype) -> int:
    # rows per native (sublane, 128) VMEM tile: f32 -> 8, bf16 -> 16, int8 -> 32
    return max(8, 32 // jnp.dtype(dtype).itemsize)


def _pick_tile(total: int, align: int, cap: int, want_tiles: int) -> int:
    """Tile size along an axis of length `total`: a multiple of `align`, at
    most `cap`, giving >= `want_tiles` grid steps when the data allows, and
    preferring an even division of `total` (no nearly-empty last step)."""
    cap = max(align, (cap // align) * align)
    target = -(-total // max(1, want_tiles))            # ceil(total / want_tiles)
    tile = min(cap, _round_up(target, align))
    tile = min(tile, _round_up(total, align))
    tile = max(align, (tile // align) * align)
    if tile >= total:
        return tile
    cand = tile
    lo = max(align, tile - 8 * align)
    while cand >= lo:                                   # nearby exact divisor?
        if total % cand == 0:
            return cand
        cand -= align
    return tile


def positional_encoding_add(x: jax.Array, pe: jax.Array) -> jax.Array:
    """out = x + pe[:x.shape[1], :]   with x: (B, S, D), pe: (max_len, D) f32."""
    B, S, D = x.shape
    max_len, d_pe = pe.shape
    assert d_pe == D and max_len >= S

    isz = jnp.dtype(x.dtype).itemsize
    pack = _sublane_pack(x.dtype)

    # Pipelined-footprint budget that is safe on every generation
    # (v7x: 64 MiB physical / 32 MiB scoped default; v5e/v6e: 128 MiB).
    budget = 24 << 20

    # Fold a batch slab into each block (fewer, bigger grid steps).
    Bb = B if B <= 8 else 8

    # Keep >= 2 grid steps (>= 4 for larger inputs) so both v7x TensorCores
    # get work; a single step is fine for tiny inputs.
    total_bytes = B * S * D * isz
    if total_bytes >= (8 << 20):
        min_steps = 4
    elif total_bytes >= (1 << 20):
        min_steps = 2
    else:
        min_steps = 1

    if D % 128 == 0:
        # -------- lane-dense 3-D path: x/out (Bb, tile_s, D), pe (1, tile_s, D)
        while Bb > 1 and 2 * D * (2 * Bb * isz + 4) * pack > budget:
            Bb //= 2                                    # keep minimal tile in budget
        batch_tiles = pl.cdiv(B, Bb)
        cap_rows = budget // (2 * D * (2 * Bb * isz + 4))
        want_seq = -(-min_steps // batch_tiles)
        tile_s = _pick_tile(S, pack, cap_rows, want_seq)
        grid = (pl.cdiv(S, tile_s), batch_tiles)        # batch innermost: pe tile stays resident

        x_in = x
        pe_in = pe.reshape(1, max_len, D)               # free view
        x_spec = pl.BlockSpec((Bb, tile_s, D), lambda s, b: (b, s, 0))
        pe_spec = pl.BlockSpec((1, tile_s, D), lambda s, b: (0, s, 0))
        out_spec = pl.BlockSpec((Bb, tile_s, D), lambda s, b: (b, s, 0))
        out_shape = jax.ShapeDtypeStruct((B, S, D), x.dtype)

        x_phys = Bb * _round_up(tile_s, pack) * D * isz
        pe_phys = _round_up(tile_s, 8) * D * 4
    else:
        # -------- D not lane-aligned (e.g. D < 128): flatten (S, D) into one
        # contiguous lane axis.  Row-major reshapes are free and pe's flat
        # index s*D + d matches x's, so no slice of pe is needed either.
        SD = S * D
        flat_pad = _round_up(Bb, pack)
        while Bb > 1 and 2 * (2 * flat_pad * isz + 32) * 128 > budget:
            Bb //= 2
            flat_pad = _round_up(Bb, pack)
        batch_tiles = pl.cdiv(B, Bb)
        cap_elems = budget // (2 * (2 * flat_pad * isz + 8 * 4))
        want_seq = -(-min_steps // batch_tiles)
        tile_f = _pick_tile(SD, 128, cap_elems, want_seq)
        grid = (pl.cdiv(SD, tile_f), batch_tiles)

        x_in = x.reshape(B, SD)
        pe_in = pe.reshape(1, max_len * D)
        x_spec = pl.BlockSpec((Bb, tile_f), lambda t, b: (b, t))
        pe_spec = pl.BlockSpec((1, tile_f), lambda t, b: (0, t))
        out_spec = pl.BlockSpec((Bb, tile_f), lambda t, b: (b, t))
        out_shape = jax.ShapeDtypeStruct((B, SD), x.dtype)

        x_phys = flat_pad * tile_f * isz
        pe_phys = 8 * tile_f * 4

    # Double-buffered x-in / out / pe-in tiles (sublane padding included) + margin.
    vmem_limit = int(2 * (2 * x_phys + pe_phys) + (4 << 20))

    out = pl.pallas_call(
        _pe_add_kernel,
        out_shape=out_shape,
        grid=grid,
        in_specs=[x_spec, pe_spec],
        out_specs=out_spec,
        compiler_params=pltpu.CompilerParams(
            dimension_semantics=("parallel", "parallel"),
            vmem_limit_bytes=vmem_limit,
        ),
    )(x_in, pe_in)

    return out.reshape(B, S, D)


if __name__ == "__main__":
    key = jax.random.PRNGKey(0)

    # Case 1: small shape consistent with the module (batch=2, seq=8, d_model=32).
    # d_model < 128 -> exercises the lane-dense flattened path.
    B, S, D, max_len = 2, 8, 32, 64
    x = jax.random.normal(key, (B, S, D), dtype=jnp.float32)
    pe = build_positional_encoding(max_len, D)

    expected = jax.block_until_ready(x + pe[None, :S, :])
    out = jax.block_until_ready(positional_encoding_add(x, pe))
    assert out.shape == x.shape and out.dtype == x.dtype
    assert float(jnp.max(jnp.abs(out - expected))) <= 1e-6

    # Case 2: lane-aligned multi-tile path — bf16 activations, f32 pe kept whole,
    # batch folded into the block, even seq tiling (no nearly-empty last step).
    B2, S2, D2, max_len2 = 2, 1040, 256, 2048
    k1, _ = jax.random.split(key)
    x2 = jax.random.normal(k1, (B2, S2, D2), dtype=jnp.bfloat16)
    pe2 = build_positional_encoding(max_len2, D2)

    expected2 = jax.block_until_ready(
        (x2.astype(jnp.float32) + pe2[None, :S2, :]).astype(jnp.bfloat16))
    out2 = jax.block_until_ready(positional_encoding_add(x2, pe2))
    assert out2.shape == x2.shape and out2.dtype == x2.dtype
    err2 = float(
        jnp.max(jnp.abs(out2.astype(jnp.float32) - expected2.astype(jnp.float32)))
    )
    assert err2 <= 2e-2

    print("KERNEL_OK")
</pallas_src>

<mosaic_0001>
module attributes {stable_mosaic.version = 11 : i64} {
  func.func @_pe_add_kernel(%arg0: i32, %arg1: i32, %arg2: memref<2x256xf32, #tpu.memory_space<vmem>>, %arg3: memref<1x256xf32, #tpu.memory_space<vmem>>, %arg4: memref<2x256xf32, #tpu.memory_space<vmem>>) attributes {dimension_semantics = [#tpu.dimension_semantics<parallel>, #tpu.dimension_semantics<parallel>], iteration_bounds = array<i64: 1, 1>, scalar_prefetch = 0 : i64, scratch_operands = 0 : i64, tpu.core_type = #tpu.core_type<tc>, window_params = [{transform_indices = @transform_0, window_bounds = array<i64: 2, 256>}, {transform_indices = @transform_1, window_bounds = array<i64: 1, 256>}, {transform_indices = @transform_2, window_bounds = array<i64: 2, 256>}]} {
    %c0 = arith.constant 0 : index
    %c0_0 = arith.constant 0 : index
    %0 = vector.load %arg2[%c0, %c0_0] : memref<2x256xf32, #tpu.memory_space<vmem>>, vector<2x256xf32>
    %c0_1 = arith.constant 0 : index
    %c0_2 = arith.constant 0 : index
    %1 = vector.load %arg3[%c0_1, %c0_2] : memref<1x256xf32, #tpu.memory_space<vmem>>, vector<1x256xf32>
    %2 = vector.broadcast %1 : vector<1x256xf32> to vector<2x256xf32>
    %3 = arith.addf %0, %2 : vector<2x256xf32>
    %c0_3 = arith.constant 0 : index
    %c0_4 = arith.constant 0 : index
    %4 = vector.load %arg4[%c0_3, %c0_4] : memref<2x256xf32, #tpu.memory_space<vmem>>, vector<2x256xf32>
    tpu.vector_store %arg4[%c0_3, %c0_4], %3 {strides = array<i32>} : memref<2x256xf32, #tpu.memory_space<vmem>>, vector<2x256xf32>,
    return
  }
  func.func @transform_0(%arg0: i32, %arg1: i32) -> (i32, i32) {
    %c0_i32 = arith.constant 0 : i32
    return %arg1, %arg0 : i32, i32
  }
  func.func @transform_1(%arg0: i32, %arg1: i32) -> (i32, i32) {
    %c0_i32 = arith.constant 0 : i32
    %c0_i32_0 = arith.constant 0 : i32
    return %c0_i32, %arg0 : i32, i32
  }
  func.func @transform_2(%arg0: i32, %arg1: i32) -> (i32, i32) {
    %c0_i32 = arith.constant 0 : i32
    return %arg1, %arg0 : i32, i32
  }
}

</mosaic_0001>

<bundles_post_ra>
// kernel: tpu_custom_call.1
= control target key start
LH: loop header
LB: loop body
LE: loop exit
PB: predicated region body
PF: predicated region fallthrough
CT: control target
= control target key end

     0   :  { %7 = vsyncpa [#allocation3], 0  ;;  %s177_s0 = inlined_call_operand.hbm [shape: f32[2,256], index: 0, kind: input, shape index: {}]   ;;  %s178_s1 = inlined_call_operand.hbm [shape: f32[1,2048], index: 1, kind: input, shape index: {}]   ;;  %s179_s2 = inlined_call_operand.hbm [shape: f32[2,256], index: 2, kind: output, shape index: {}]  }
   0x1   :  { %8 = vsyncpa [#allocation6], 0 }
   0x2   :  { %9 = vsyncpa [#allocation4], 0  ;;  %s15_s11 = sshll.u32 %s177_s0, 4  ;;  %s150_s12 = smov [#allocation2]   ;;  %s16_s11 = int_to_ptr.hbm [resolvable:$true] %s15_s11 }
   0x3   :  { %s17_s13 = sshll.u32 %s150_s12, 4  ;;  %s26_s16 = sshll.u32 %s178_s1, 4  ;;  %s18_s13 = int_to_ptr.vmem [resolvable:$true] %s17_s13  ;;  %s27_s16 = int_to_ptr.hbm [resolvable:$true] %s26_s16 }
   0x4   :  { %20 = dma.hbm_to_vmem [thread:$0]  %s16_s11, 64, %s18_s13, [#allocation3]  }
   0x5   :  { %s151_s17 = smov [#allocation5]  }
   0x6   :  { %s28_s18 = sshll.u32 %s151_s17, 4  ;;  %s29_s18 = int_to_ptr.vmem [resolvable:$true] %s28_s18 }
   0x7   :  { %31 = dma.hbm_to_vmem [thread:$0]  %s27_s16, 32, %s29_s18, [#allocation6]  }
   0x8   :  { %144 = dma.done.wait [#allocation3], 64  }
   0x9   :  { %145 = vsyncadd [#allocation3], 4294967232 }
   0xa   :  { %146 = dma.done.wait [#allocation6], 32  }
   0xb   :  { %147 = vsyncadd [#allocation6], 4294967264  ;;  %v41_v0 = vld [vmem:[#allocation5] sm:$0x3]  ;;  %vm46_vm0 = vcmask 1041408   ;;  %s152_s0 = smov [#allocation7]  }
   0xc   :  { %v43_v1 = vperm.slane %v41_v0, 0  ;;  %v44_v2 = vperm.slane %v41_v0, 1  ;;  %v40_v3 = vld [vmem:[#allocation2] sm:$0xf]  ;;  %s56_s19 = sshll.u32 %s152_s0, 4  ;;  %s58_s21 = sshll.u32 %s179_s2, 4  ;;  %s57_s19 = int_to_ptr.vmem [resolvable:$true] %s56_s19  ;;  %s59_s21 = int_to_ptr.hbm [resolvable:$true] %s58_s21 }
   0xe   :  { %v45_v4 = vrot.slane %v44_v2, 6 }
  0x10   :  { %v47_v5 = vsel %vm46_vm0, %v43_v1, %v45_v4 }
  0x11   :  { %v49_v6 = vadd.f32 %v47_v5, %v40_v3 }
  0x13   :  { %50 = vst [vmem:[#allocation7] sm:$0xf] %v49_v6 }
  0x14   :  { %61 = dma.vmem_to_hbm [thread:$0]  %s57_s19, 64, %s59_s21, [#allocation4]  }
  0x15   :  { %148 = dma.done.wait [#allocation4], 64  }
  0x16   :  { %149 = vsyncadd [#allocation4], 4294967232 }
  0x17   :  { %66 = vsyncpa [#allocation3], 1 }
  0x18   :  { %67 = vsyncpa [#allocation6], 1 }
  0x19   :  { %68 = vsyncpa [#allocation4], 1 }

</bundles_post_ra>
